<compile_context>
chip_gen: v7x
topology: tpu7x:2x2x1
jax: 0.10.0
libtpu: 0.0.40
codegen_flags: <defaults>
</compile_context>

<pallas_src>
import numpy as np
import jax
import jax.numpy as jnp
from jax.experimental import pallas as pl
from jax.experimental.pallas import tpu as pltpu

INPUT_DIM = 6      # ellipse symbol features
POS_DIM = 20       # 2 * 10 positional encoding
HIDDEN = 6         # hidden_dim (must be 6, see fidelity note)
E2S_OUT = 6        # mlp_td_e2s output width
OUT_DIM = 4        # output_dim of mlp_bu_o2out
NUM_ITERS = 5
W_HIST, W_TOPDOWN, W_BOTTOMUP, W_ATTN = 0.25, 0.25, 0.25, 0.25
ATTN_TEMP = 0.1

# ---- packed activation layout: x = [sym | pos | o | e] -> 38 columns --------
X_SYM, X_POS = 0, INPUT_DIM
X_O = INPUT_DIM + POS_DIM
X_E = INPUT_DIM + POS_DIM + HIDDEN
X_DIM = INPUT_DIM + POS_DIM + 2 * HIDDEN            # 38

# ---- stage-1 fused output columns (y1 = x @ W_A + b_A) ----------------------
C_EMB, C_T1, C_D1, C_E2O, C_OUT = 0, 6, 12, 18, 24  # widths 6,6,6,6,4

# ---- stage-2 fused output columns (y2 = x2 @ W_B + b_B) ---------------------
C_S1, C_TD2, C_R = 0, 6, 12                          # widths 6,6,6
X2_DIM = 18

# ---- weight slab rows: single (72, 128) f32 array -> one DMA ----------------
R_WA, R_BA = 0, 38
R_WB, R_BB = 40, 58
R_WC, R_BC = 64, 70
SLAB_ROWS, SLAB_COLS = 72, 128


def eglom_kernel(x_ref, w_ref, y1_ref, y2_ref):
    f32 = jnp.float32
    dot = lambda a, b: jnp.dot(a, b, preferred_element_type=f32)
    relu = lambda v: jnp.maximum(v, 0.0)

    x = x_ref[...]                                   # (M, 38) = [sym|pos|o|e]
    m = x.shape[0]

    # -- stage 1: all Linears whose input is sym/pos/o/e, one fused MXU pass --
    w_a = w_ref[R_WA:R_WA + X_DIM, :]                # (38, 128)
    b_a = w_ref[R_BA:R_BA + 1, :]                    # (1, 128)
    y1 = dot(x, w_a) + b_a                           # (M, 128); cols >= 28 are 0

    # -- stage 2: second layers, block-diagonal fused RHS ---------------------
    #    x2 = [node_emb | relu(td_o2e L1) | relu(td_e2s L1)]
    head = y1[:, :X2_DIM]
    col = jax.lax.broadcasted_iota(jnp.int32, (m, X2_DIM), 1)
    x2 = jnp.where(col < HIDDEN, head, relu(head))   # no ReLU on the encoder output
    w_b = w_ref[R_WB:R_WB + X2_DIM, :]               # (18, 128)
    b_b = w_ref[R_BB:R_BB + 1, :]
    y2 = dot(x2, w_b) + b_b                          # (M, 128); cols >= 18 are 0

    # -- stage 3: mlp_bu_s2e second Linear (feeds only the dead h_e update) ---
    s1 = relu(y2[:, C_S1:C_S1 + HIDDEN])
    w_c = w_ref[R_WC:R_WC + HIDDEN, :]
    b_c = w_ref[R_BC:R_BC + 1, :]
    e_bottom_up = (dot(s1, w_c) + b_c)[:, :HIDDEN]

    e_top_down = relu(y2[:, C_TD2:C_TD2 + HIDDEN])
    o_bottom_up = relu(y1[:, C_E2O:C_E2O + HIDDEN])

    # -- self-attention over o.  o is never reassigned in the reference loop,
    #    so it is identically zero; the flattened-over-batch form below equals
    #    the per-batch softmax attention in that case (uniform weights applied
    #    to a zero tensor).
    o = x[:, X_O:X_O + HIDDEN]
    scores = jax.lax.dot_general(o, o, (((1,), (1,)), ((), ())),
                                 preferred_element_type=f32) / ATTN_TEMP
    scores = scores - jnp.max(scores, axis=-1, keepdims=True)
    p = jnp.exp(scores)
    attn = p * pl.reciprocal(jnp.sum(p, axis=-1, keepdims=True), approx=True)
    weighted = dot(attn, o)

    # e_t / o_t / h_e / h_o are updated 5x in the reference but never reach
    # (next_hints, output, r_t): the recurrence is dead w.r.t. the outputs and
    # is elided (perf review).  The branch values above are kept (computed
    # once) for structural fidelity.
    _unused = (e_bottom_up, e_top_down, o_bottom_up, weighted)

    # lane-dense (128-wide) unmasked stores; wrapper slices logits / r_t out.
    y1_ref[...] = y1
    y2_ref[...] = y2


def init_params(key):
    """Per-layer (W[in, out], b[1, out]) pairs mirroring the torch module."""
    def linear(k, fan_in, fan_out, scale=0.1):
        kw, kb = jax.random.split(k)
        w = jax.random.normal(kw, (fan_in, fan_out), jnp.float32) * scale
        b = jax.random.normal(kb, (1, fan_out), jnp.float32) * scale
        return w, b

    ks = jax.random.split(key, 10)
    return {
        's2emb': linear(ks[0], INPUT_DIM, HIDDEN),
        'p2emb': linear(ks[1], POS_DIM, HIDDEN),
        'e2o':   linear(ks[2], HIDDEN, HIDDEN),
        'o2e1':  linear(ks[3], HIDDEN + POS_DIM, HIDDEN),
        'o2e2':  linear(ks[4], HIDDEN, HIDDEN),
        's2e1':  linear(ks[5], INPUT_DIM, HIDDEN),   # Linear(6, hidden); hidden=6
        's2e2':  linear(ks[6], HIDDEN, HIDDEN),
        'e2s1':  linear(ks[7], HIDDEN + POS_DIM, HIDDEN),
        'e2s2':  linear(ks[8], HIDDEN, E2S_OUT),
        'o2out': linear(ks[9], HIDDEN, OUT_DIM),
    }


def pack_params(params):
    """Pack all 10 Linear layers (20 tensors) into one (72, 128) f32 slab."""
    slab = np.zeros((SLAB_ROWS, SLAB_COLS), np.float32)

    def put(r, c, a):
        a = np.asarray(a, np.float32)
        if a.ndim == 1:
            a = a[None, :]
        slab[r:r + a.shape[0], c:c + a.shape[1]] = a

    w_s2emb, b_s2emb = params['s2emb']
    w_p2emb, b_p2emb = params['p2emb']
    w_e2o,   b_e2o   = params['e2o']
    w_o2e1,  b_o2e1  = params['o2e1']
    w_o2e2,  b_o2e2  = params['o2e2']
    w_s2e1,  b_s2e1  = params['s2e1']
    w_s2e2,  b_s2e2  = params['s2e2']
    w_e2s1,  b_e2s1  = params['e2s1']
    w_e2s2,  b_e2s2  = params['e2s2']
    w_o2out, b_o2out = params['o2out']

    # W_A / b_A : [sym | pos | o | e] -> fused stage-1 outputs
    put(R_WA + X_SYM, C_EMB, w_s2emb)                               # encoder (sym)
    put(R_WA + X_POS, C_EMB, w_p2emb)                               # encoder (pos)
    put(R_BA, C_EMB, np.asarray(b_s2emb) + np.asarray(b_p2emb))
    put(R_WA + X_O,   C_T1, np.asarray(w_o2e1)[:HIDDEN])            # td_o2e L1: concat([o, pos])
    put(R_WA + X_POS, C_T1, np.asarray(w_o2e1)[HIDDEN:])
    put(R_BA, C_T1, b_o2e1)
    put(R_WA + X_E,   C_D1, np.asarray(w_e2s1)[:HIDDEN])            # td_e2s L1: concat([e, pos])
    put(R_WA + X_POS, C_D1, np.asarray(w_e2s1)[HIDDEN:])
    put(R_BA, C_D1, b_e2s1)
    put(R_WA + X_E,   C_E2O, w_e2o)                                 # bu_e2o (input e)
    put(R_BA, C_E2O, b_e2o)
    put(R_WA + X_O,   C_OUT, w_o2out)                               # bu_o2out (input o)
    put(R_BA, C_OUT, b_o2out)

    # W_B / b_B : block-diagonal second layers
    put(R_WB + 0,          C_S1,  w_s2e1)                           # bu_s2e L1 (input node_emb)
    put(R_BB, C_S1,  b_s2e1)
    put(R_WB + HIDDEN,     C_TD2, w_o2e2)                           # td_o2e L2
    put(R_BB, C_TD2, b_o2e2)
    put(R_WB + 2 * HIDDEN, C_R,   w_e2s2)                           # td_e2s L2 -> r_t
    put(R_BB, C_R,   b_e2s2)

    # W_C / b_C : bu_s2e L2
    put(R_WC, 0, w_s2e2)
    put(R_BC, 0, b_s2e2)

    return jnp.asarray(slab)


def eglom_forward(ellipse_symbols, positions, weight_slab):
    B, N, _ = ellipse_symbols.shape
    assert B == 2, ("the PyTorch `next_hints, output = mlp_bu_o2out(o)` tuple "
                    "unpack requires batch == 2")
    M = B * N
    M_pad = max(8, ((M + 7) // 8) * 8)

    sym = ellipse_symbols.reshape(M, INPUT_DIM).astype(jnp.float32)
    pos = positions.reshape(M, POS_DIM).astype(jnp.float32)
    zeros_h = jnp.zeros((M, HIDDEN), jnp.float32)      # o and e init (torch.zeros)
    x = jnp.concatenate([sym, pos, zeros_h, zeros_h], axis=-1)      # (M, 38)
    if M_pad != M:
        x = jnp.pad(x, ((0, M_pad - M), (0, 0)))

    y1, y2 = pl.pallas_call(
        eglom_kernel,
        in_specs=[pl.BlockSpec(memory_space=pltpu.MemorySpace.VMEM),
                  pl.BlockSpec(memory_space=pltpu.MemorySpace.VMEM)],
        out_specs=[pl.BlockSpec(memory_space=pltpu.MemorySpace.VMEM),
                   pl.BlockSpec(memory_space=pltpu.MemorySpace.VMEM)],
        out_shape=[jax.ShapeDtypeStruct((M_pad, SLAB_COLS), jnp.float32),
                   jax.ShapeDtypeStruct((M_pad, SLAB_COLS), jnp.float32)],
    )(x, weight_slab)

    logits = y1[:M, C_OUT:C_OUT + OUT_DIM].reshape(B, N, OUT_DIM)
    r_t = y2[:M, C_R:C_R + E2S_OUT].reshape(B, N, E2S_OUT)
    next_hints = logits[0]     # PyTorch tuple-unpack along the batch dim
    output = logits[1]
    return next_hints, output, r_t


def eglom_reference(ellipse_symbols, positions, params):
    """Pure-JAX transcription of the PyTorch eGLOM.forward (same quirks)."""
    relu = jax.nn.relu
    lin = lambda v, wb: v @ wb[0] + wb[1]
    B, N, _ = ellipse_symbols.shape
    sym, pos = ellipse_symbols, positions
    e = jnp.zeros((B, N, HIDDEN), jnp.float32)
    o = jnp.zeros((B, N, HIDDEN), jnp.float32)
    h_e = jnp.zeros((B, N, HIDDEN), jnp.float32)
    h_o = jnp.zeros((B, N, HIDDEN), jnp.float32)
    for _ in range(NUM_ITERS):
        node = lin(sym, params['s2emb']) + lin(pos, params['p2emb'])
        e_bu = lin(relu(lin(node, params['s2e1'])), params['s2e2'])
        e_td = relu(lin(relu(lin(jnp.concatenate([o, pos], -1), params['o2e1'])),
                        params['o2e2']))
        h_e = W_HIST * h_e + W_BOTTOMUP * e_bu + W_TOPDOWN * e_td
        o_bu = relu(lin(e, params['e2o']))
        scores = jnp.einsum('bnh,bmh->bnm', o, o) / ATTN_TEMP
        weighted = jnp.einsum('bnm,bmh->bnh', jax.nn.softmax(scores, -1), o)
        h_o = W_HIST * h_o + W_BOTTOMUP * o_bu + W_ATTN * weighted
        r_t = lin(relu(lin(jnp.concatenate([e, pos], -1), params['e2s1'])),
                  params['e2s2'])
        logits = lin(o, params['o2out'])
    return logits[0], logits[1], r_t


if __name__ == "__main__":
    key = jax.random.PRNGKey(0)
    k_sym, k_pos, k_par = jax.random.split(key, 3)

    B, N = 2, 8   # B must be 2 to mirror the PyTorch tuple-unpack of mlp_bu_o2out(o)
    ellipse_symbols = jax.random.normal(k_sym, (B, N, INPUT_DIM), jnp.float32)
    positions = jax.random.normal(k_pos, (B, N, POS_DIM), jnp.float32)
    params = init_params(k_par)
    weight_slab = pack_params(params)

    next_hints, output, r_t = eglom_forward(ellipse_symbols, positions, weight_slab)
    jax.block_until_ready((next_hints, output, r_t))

    assert next_hints.shape == (N, OUT_DIM)
    assert output.shape == (N, OUT_DIM)
    assert r_t.shape == (B, N, E2S_OUT)
    assert jnp.all(jnp.isfinite(next_hints))
    assert jnp.all(jnp.isfinite(output))
    assert jnp.all(jnp.isfinite(r_t))

    nh_ref, out_ref_v, rt_ref = eglom_reference(ellipse_symbols, positions, params)
    np.testing.assert_allclose(np.asarray(next_hints), np.asarray(nh_ref),
                               rtol=1e-5, atol=1e-5)
    np.testing.assert_allclose(np.asarray(output), np.asarray(out_ref_v),
                               rtol=1e-5, atol=1e-5)
    np.testing.assert_allclose(np.asarray(r_t), np.asarray(rt_ref),
                               rtol=1e-5, atol=1e-5)

    print("KERNEL_OK")
</pallas_src>

<mosaic_0001>
module attributes {stable_mosaic.version = 11 : i64} {
  func.func @eglom_kernel(%arg0: memref<16x38xf32, #tpu.memory_space<vmem>>, %arg1: memref<72x128xf32, #tpu.memory_space<vmem>>, %arg2: memref<16x128xf32, #tpu.memory_space<vmem>>, %arg3: memref<16x128xf32, #tpu.memory_space<vmem>>) attributes {dimension_semantics = [], scalar_prefetch = 0 : i64, scratch_operands = 0 : i64, tpu.core_type = #tpu.core_type<tc>} {
    %c0 = arith.constant 0 : index
    %c0_0 = arith.constant 0 : index
    %0 = vector.load %arg0[%c0, %c0_0] : memref<16x38xf32, #tpu.memory_space<vmem>>, vector<16x38xf32>
    %c0_1 = arith.constant 0 : index
    %c0_2 = arith.constant 0 : index
    %1 = vector.load %arg1[%c0_1, %c0_2] : memref<72x128xf32, #tpu.memory_space<vmem>>, vector<38x128xf32>
    %c38 = arith.constant 38 : index
    %c0_3 = arith.constant 0 : index
    %2 = vector.load %arg1[%c38, %c0_3] : memref<72x128xf32, #tpu.memory_space<vmem>>, vector<1x128xf32>
    %cst = arith.constant dense<0.000000e+00> : vector<16x128xf32>
    %3 = tpu.matmul %0, %1, %cst {dimension_numbers = #tpu.dot_dimension_numbers<[1], [0], [0], [1], [0, 0, 1, 1], [], []>} : vector<16x38xf32>, vector<38x128xf32>, vector<16x128xf32> -> vector<16x128xf32>
    %4 = vector.broadcast %2 : vector<1x128xf32> to vector<16x128xf32>
    %5 = arith.addf %3, %4 : vector<16x128xf32>
    %6 = vector.extract_strided_slice %5 {offsets = [0, 0], sizes = [16, 18], strides = [1, 1]} : vector<16x128xf32> to vector<16x18xf32>
    %7 = tpu.iota {dimensions = array<i32: 1>} : vector<16x18xi32>
    %c6_i32 = arith.constant 6 : i32
    %8 = vector.broadcast %c6_i32 : i32 to vector<16x18xi32>
    %9 = arith.cmpi slt, %7, %8 : vector<16x18xi32>
    %cst_4 = arith.constant 0.000000e+00 : f32
    %10 = vector.broadcast %cst_4 : f32 to vector<16x18xf32>
    %11 = arith.maximumf %6, %10 : vector<16x18xf32>
    %12 = arith.select %9, %6, %11 : vector<16x18xi1>, vector<16x18xf32>
    %c40 = arith.constant 40 : index
    %c0_5 = arith.constant 0 : index
    %13 = vector.load %arg1[%c40, %c0_5] : memref<72x128xf32, #tpu.memory_space<vmem>>, vector<18x128xf32>
    %c58 = arith.constant 58 : index
    %c0_6 = arith.constant 0 : index
    %14 = vector.load %arg1[%c58, %c0_6] : memref<72x128xf32, #tpu.memory_space<vmem>>, vector<1x128xf32>
    %cst_7 = arith.constant dense<0.000000e+00> : vector<16x128xf32>
    %15 = tpu.matmul %12, %13, %cst_7 {dimension_numbers = #tpu.dot_dimension_numbers<[1], [0], [0], [1], [0, 0, 1, 1], [], []>} : vector<16x18xf32>, vector<18x128xf32>, vector<16x128xf32> -> vector<16x128xf32>
    %16 = vector.broadcast %14 : vector<1x128xf32> to vector<16x128xf32>
    %17 = arith.addf %15, %16 : vector<16x128xf32>
    %c0_8 = arith.constant 0 : index
    %c0_9 = arith.constant 0 : index
    %18 = vector.load %arg2[%c0_8, %c0_9] : memref<16x128xf32, #tpu.memory_space<vmem>>, vector<16x128xf32>
    tpu.vector_store %arg2[%c0_8, %c0_9], %5 {strides = array<i32>} : memref<16x128xf32, #tpu.memory_space<vmem>>, vector<16x128xf32>,
    %c0_10 = arith.constant 0 : index
    %c0_11 = arith.constant 0 : index
    %19 = vector.load %arg3[%c0_10, %c0_11] : memref<16x128xf32, #tpu.memory_space<vmem>>, vector<16x128xf32>
    tpu.vector_store %arg3[%c0_10, %c0_11], %17 {strides = array<i32>} : memref<16x128xf32, #tpu.memory_space<vmem>>, vector<16x128xf32>,
    return
  }
}

</mosaic_0001>

<bundles_post_ra>
// kernel: tpu_custom_call.1
= control target key start
LH: loop header
LB: loop body
LE: loop exit
PB: predicated region body
PF: predicated region fallthrough
CT: control target
= control target key end

     0   :  { %9 = vsyncpa [#allocation3], 0  ;;  %s524_s0 = inlined_call_operand.hbm [shape: f32[16,38], index: 0, kind: input, shape index: {}]   ;;  %s525_s1 = inlined_call_operand.hbm [shape: f32[72,128], index: 1, kind: input, shape index: {}]   ;;  %s526_s2 = inlined_call_operand.hbm [shape: f32[16,128], index: 2, kind: output, shape index: {0}]   ;;  %s527_s3 = inlined_call_operand.hbm [shape: f32[16,128], index: 3, kind: output, shape index: {1}]  }
   0x1   :  { %10 = vsyncpa [#allocation6], 0 }
   0x2   :  { %11 = vsyncpa [#allocation4], 0 }
   0x3   :  { %12 = vsyncpa [#allocation9], 0  ;;  %s436_s12 = smov [#allocation2]   ;;  %s340_s16 = scalar_lea.hbm %s524_s0, 256 }
   0x4   :  { %s18_s13 = sshll.u32 %s436_s12, 4  ;;  %p341_p0 = scmp.ne.s32.totalorder %s524_s0, %s340_s16  ;;  %s19_s13 = int_to_ptr.vmem [resolvable:$true] %s18_s13 }
   0x5   :  { %p344_p1 = scmp.lt.u32.totalorder %s340_s16, %s524_s0 }
   0x7   :  { %p346_p2 = pnand %p344_p1, %p341_p0 }
   0x9   :  { %349 = shalt.err (!%p346_p2)
}
   0xa   :  { %s350_s21 = scalar_lea.vmem %s19_s13, 256  ;;  %p355_p4 = scmp.lt.s32.totalorder %s19_s13, %s19_s13 }
   0xb   :  { %p351_p3 = scmp.ne.s32.totalorder %s19_s13, %s350_s21  ;;  %p356_p5 = scmp.lt.s32.totalorder %s350_s21, %s350_s21 }
   0xd   :  { %p357_p6 = por %p356_p5, %p355_p4 }
   0xf   :  { %p358_p7 = pnand %p357_p6, %p351_p3 }
  0x11   :  { %361 = shalt.err (!%p358_p7)
}
  0x12   :  { %s437_s22 = smov 128   ;;  %s438_s23 = smov 8  }
  0x13   :  { %24 = dma.hbm_to_vmem [thread:$0]  %s524_s0, 256, %s19_s13, [#allocation3], %s437_s22, %s437_s22, %s438_s23  }
  0x14   :  { %s439_s26 = smov [#allocation5]   ;;  %s362_s30 = scalar_lea.hbm %s525_s1, 1152 }
  0x15   :  { %s30_s27 = sshll.u32 %s439_s26, 4  ;;  %p363_p8 = scmp.ne.s32.totalorder %s525_s1, %s362_s30  ;;  %s31_s27 = int_to_ptr.vmem [resolvable:$true] %s30_s27 }
  0x16   :  { %p366_p9 = scmp.lt.u32.totalorder %s362_s30, %s525_s1 }
  0x18   :  { %p368_p10 = pnand %p366_p9, %p363_p8 }
  0x1a   :  { %371 = shalt.err (!%p368_p10)
}
  0x1b   :  { %s372_s8 = scalar_lea.vmem %s31_s27, 1152  ;;  %p377_p12 = scmp.lt.s32.totalorder %s31_s27, %s31_s27 }
  0x1c   :  { %p373_p11 = scmp.ne.s32.totalorder %s31_s27, %s372_s8  ;;  %p378_p13 = scmp.lt.s32.totalorder %s372_s8, %s372_s8 }
  0x1e   :  { %p379_p0 = por %p378_p13, %p377_p12 }
  0x20   :  { %p380_p1 = pnand %p379_p0, %p373_p11 }
  0x22   :  { %383 = shalt.err (!%p380_p1)
}
  0x23   :  { %36 = dma.hbm_to_vmem [thread:$0]  %s525_s1, 1152, %s31_s27, [#allocation6], %s437_s22, %s437_s22, %s438_s23  }
  0x24   :  { %428 = dma.done.wait [#allocation3], 256  }
  0x25   :  { %429 = vsyncadd [#allocation3], 4294967040 }
  0x26   :  { %430 = dma.done.wait [#allocation6], 1152  }
  0x27   :  { %431 = vsyncadd [#allocation6], 4294966144  ;;  %vm55_vm0 = vcmask 310272   ;;  %v45_v0 = vld [vmem:[#allocation5] sm:$0xff]  ;;  %v46_v1 = vld [vmem:[#allocation5 + $0x8] sm:$0xff]  ;;  %vm62_vm1 = vcmask 1045504   ;;  %v141_v13 = vlaneseq }
  0x28   :  { %v47_v2 = vld [vmem:[#allocation5 + $0x10] sm:$0xff]  ;;  %v322_v3 = vpack.c.bf16 %v46_v1, %v45_v0  ;;  %v48_v4 = vld [vmem:[#allocation5 + $0x18] sm:$0xff]  ;;  %v49_v7 = vld [vmem:[#allocation5 + $0x20] sm:$0x3f]  ;;  %vm163_vm2 = vcmask 1041408   ;;  %vm156_vm4 = vcmask 146432  }
  0x29   :  { %v43_v5 = vld [vmem:[#allocation2] sm:$0xff]  ;;  %v326_v6 = vpack.c.bf16 %v48_v4, %v47_v2  ;;  %v44_v8 = vld [vmem:[#allocation2 + $0x8] sm:$0xff]  ;;  %v148_v9 = vld [vmem:[#allocation5 + $0x28] sm:$0xff]  ;;  %v142_v15 = vand.u32 127, %v141_v13  ;;  %s440_s1 = smov [#allocation7]  }
  0x2a   :  { %310 = vmatprep.mubr.msk.f32.mxu0 %vm55_vm0, %v43_v5  ;;  %323 = vmatprep.subr.bf16.mxu0 %v322_v3  ;;  %v149_v10 = vld [vmem:[#allocation5 + $0x30] sm:$0xff]  ;;  %v150_v12 = vld [vmem:[#allocation5 + $0x38] sm:$0x3]  ;;  %v280_v14 = vld [vmem:[#allocation5 + $0x26] ss:$0 sm:$0xff]  ;;  %s251_s10 = sshll.u32 %s440_s1, 4  ;;  %s252_s10 = int_to_ptr.vmem [resolvable:$true] %s251_s10 }
  0x2b   :  { %325 = vmatpush3.bf16.msra.mxu0 %v322_v3  ;;  %v330_v11 = vpack.c.bf16 %v149_v10, %v148_v9  ;;  %vm143_vm3 = vcmp.lt.s32.totalorder %v142_v15, 6  ;;  %s384_s11 = scalar_lea.vmem %s252_s10, 256  ;;  %p389_p3 = scmp.lt.s32.totalorder %s252_s10, %s252_s10 }
  0x2c   :  { %327 = vmatprep.subr.bf16.mxu0 %v326_v6  ;;  %p385_p2 = scmp.ne.s32.totalorder %s252_s10, %s384_s11  ;;  %p390_p4 = scmp.lt.s32.totalorder %s384_s11, %s384_s11 }
  0x2d   :  { %331 = vmatprep.subr.bf16.mxu1 %v330_v11 }
  0x2e   :  { %333 = vmatpush3.bf16.msra.mxu1 %v330_v11  ;;  %p391_p5 = por %p390_p4, %p389_p3 }
  0x2f   :  { %329 = vmatpush3.bf16.msra.mxu0 %v326_v6  ;;  %317 = vmatprep.subr.msk.mxu1 %vm163_vm2, %v150_v12 }
  0x30   :  { %308 = vmatprep.subr.msk.mxu0 %vm62_vm1, %v49_v7  ;;  %p392_p6 = pnand %p391_p5, %p385_p2 }
  0x32   :  { %318 = vmatpush3.msk.msra.mxu1 %vm163_vm2, %v150_v12 }
  0x33   :  { %309 = vmatpush3.msk.msra.mxu0 %vm62_vm1, %v49_v7 }
  0x34   :  { %311 = vmatmul.mubr.msk.f32.vlgmr.msra.gmra.mrb[0].mxu0 %vm55_vm0, %v44_v8 }
 0x107   :  { %v312_v16 = vpop.f32.mrb[0].mxu0 }
 0x108   :  { %v138_v17 = vadd.f32 %v312_v16, %v280_v14  ;;  %v132_v18 = vpop.f32.mrb[1].mxu0 }
 0x109   :  { %v133_v19 = vadd.f32 %v280_v14, %v132_v18 }
 0x10a   :  { %v145_v20 = vmax.f32 %v138_v17, 0.0  ;;  %243 = vst [vmem:[#allocation7 + $0x8] sm:$0xff] %v138_v17 }
 0x10b   :  { %242 = vst [vmem:[#allocation7] sm:$0xff] %v133_v19  ;;  %v144_v21 = vmax.f32 %v133_v19, 0.0 }
 0x10c   :  { %v147_v23 = vsel %vm143_vm3, %v138_v17, %v145_v20 }
 0x10d   :  { %v146_v22 = vsel %vm143_vm3, %v133_v19, %v144_v21 }
 0x10e   :  { %319 = vmatprep.mubr.msk.f32.mxu1 %vm156_vm4, %v146_v22 }
 0x10f   :  { %320 = vmatmul.mubr.msk.f32.vlgmr.msra.gmra.mrb[0].mxu1 %vm156_vm4, %v147_v23 }
 0x110   :  { %395 = shalt.err (!%p392_p6)
}
 0x111   :  { %s396_s14 = scalar_lea.hbm %s526_s2, 256 }
 0x112   :  { %p397_p7 = scmp.ne.s32.totalorder %s526_s2, %s396_s14  ;;  %p400_p8 = scmp.lt.u32.totalorder %s396_s14, %s526_s2 }
 0x114   :  { %p402_p9 = pnand %p400_p8, %p397_p7 }
 0x116   :  { %405 = shalt.err (!%p402_p9)
}
 0x117   :  { %257 = dma.vmem_to_hbm [thread:$0]  %s252_s10, 256, %s526_s2, [#allocation4], %s437_s22, %s437_s22, %s438_s23   ;;  %v284_v24 = vld [vmem:[#allocation5 + $0x3a] ss:$0 sm:$0xff] }
 0x118   :  { %s441_s21 = smov [#allocation8]  }
 0x119   :  { %s263_s24 = sshll.u32 %s441_s21, 4  ;;  %s264_s24 = int_to_ptr.vmem [resolvable:$true] %s263_s24 }
 0x11a   :  { %s406_s25 = scalar_lea.vmem %s264_s24, 256  ;;  %p411_p11 = scmp.lt.s32.totalorder %s264_s24, %s264_s24 }
 0x11b   :  { %p407_p10 = scmp.ne.s32.totalorder %s264_s24, %s406_s25  ;;  %p412_p12 = scmp.lt.s32.totalorder %s406_s25, %s406_s25 }
 0x11d   :  { %p413_p13 = por %p412_p12, %p411_p11 }
 0x11f   :  { %p414_p0 = pnand %p413_p13, %p407_p10 }
 0x1e2   :  { %v321_v25 = vpop.f32.mrb[0].mxu1 }
 0x1e3   :  { %v239_v26 = vadd.f32 %v321_v25, %v284_v24  ;;  %v233_v27 = vpop.f32.mrb[1].mxu1 }
 0x1e4   :  { %v234_v28 = vadd.f32 %v284_v24, %v233_v27 }
 0x1e5   :  { %245 = vst [vmem:[#allocation8 + $0x8] sm:$0xff] %v239_v26 }
 0x1e6   :  { %244 = vst [vmem:[#allocation8] sm:$0xff] %v234_v28 }
 0x1e7   :  { %417 = shalt.err (!%p414_p0)
}
 0x1e8   :  { %s418_s2 = scalar_lea.hbm %s527_s3, 256 }
 0x1e9   :  { %p419_p1 = scmp.ne.s32.totalorder %s527_s3, %s418_s2  ;;  %p422_p2 = scmp.lt.u32.totalorder %s418_s2, %s527_s3 }
 0x1eb   :  { %p424_p3 = pnand %p422_p2, %p419_p1 }
 0x1ed   :  { %427 = shalt.err (!%p424_p3)
}
 0x1ee   :  { %269 = dma.vmem_to_hbm [thread:$0]  %s264_s24, 256, %s527_s3, [#allocation9], %s437_s22, %s437_s22, %s438_s23  }
 0x1ef   :  { %432 = dma.done.wait [#allocation4], 256  }
 0x1f0   :  { %433 = vsyncadd [#allocation4], 4294967040 }
 0x1f1   :  { %434 = dma.done.wait [#allocation9], 256  }
 0x1f2   :  { %435 = vsyncadd [#allocation9], 4294967040 }
 0x1f3   :  { %276 = vsyncpa [#allocation3], 1 }
 0x1f4   :  { %277 = vsyncpa [#allocation6], 1 }
 0x1f5   :  { %278 = vsyncpa [#allocation4], 1 }
 0x1f6   :  { %279 = vsyncpa [#allocation9], 1 }

</bundles_post_ra>
